<compile_context>
chip_gen: v7x
topology: tpu7x:2x2x1
jax: 0.10.0
libtpu: 0.0.40
codegen_flags: <defaults>
</compile_context>

<pallas_src>
import functools
import math
import random

import jax
import jax.numpy as jnp
import numpy as np
from jax.experimental import pallas as pl
from jax.experimental.pallas import tpu as pltpu

EPS_NORMALIZE = 1e-12                       # torch F.normalize default eps
EPS_NORMALIZE_SQ = EPS_NORMALIZE * EPS_NORMALIZE
EPS_COSINE = 1e-8                           # module's cosineSimilarity clamp


# ----------------------------- VMEM budgeting --------------------------------

@functools.lru_cache(maxsize=1)
def _phys_vmem_bytes():
    try:
        return int(pltpu.get_tpu_info().vmem_capacity_bytes)
    except Exception:
        return 64 * 1024 * 1024             # conservative: v7x per-TensorCore VMEM


def _vmem_budgets():
    phys = _phys_vmem_bytes()
    # (resident-buffer budget for all pipeline buffers + f32 temporaries,
    #  explicit scoped-VMEM limit passed to the compiler)
    return phys // 4, phys // 2


def _pick_hw_tile(hw, bytes_per_lane, budget_bytes):
    """Largest HW tile dividing hw, multiple of 128 (or the full hw), keeping the
    TOTAL resident VMEM (bytes_per_lane already counts every double-buffered input
    plus f32 temporaries) under budget_bytes."""
    bytes_per_lane = max(1, bytes_per_lane)
    if hw * bytes_per_lane <= budget_bytes:
        return hw
    t = (budget_bytes // bytes_per_lane // 128) * 128
    while t >= 128:
        if hw % t == 0:
            return t
        t -= 128
    # Budget smaller than one 128-lane slab: smallest feasible tile instead
    # (vmem_limit_bytes is raised explicitly so this still compiles).
    t = 128
    while t < hw:
        if hw % t == 0:
            return t
        t += 128
    return hw


# ------------------------------ Pallas kernels --------------------------------

def _normalize_dim0_kernel(x_ref, o_ref):
    # x_ref: (N, C, T) tile.  L2-normalize over the batch axis (dim 0).
    x = x_ref[...].astype(jnp.float32)
    sumsq = jnp.sum(x * x, axis=0, keepdims=True)                 # (1, C, T)
    inv = jax.lax.rsqrt(jnp.maximum(sumsq, EPS_NORMALIZE_SQ))     # EUP rsqrt on slab
    o_ref[...] = (x * inv).astype(o_ref.dtype)


def _normalize_gap_kernel(x_ref, o_ref, acc_ref, *, inv_hw):
    # Fused F.normalize(dim=0) + AdaptiveAvgPool2d((1,1)) + flatten.
    @pl.when(pl.program_id(0) == 0)
    def _():
        acc_ref[...] = jnp.zeros_like(acc_ref)
    x = x_ref[...].astype(jnp.float32)                            # (N, C, T)
    sumsq = jnp.sum(x * x, axis=0, keepdims=True)
    inv = jax.lax.rsqrt(jnp.maximum(sumsq, EPS_NORMALIZE_SQ))
    acc_ref[...] += jnp.sum(x * inv, axis=-1)

    @pl.when(pl.program_id(0) == pl.num_programs(0) - 1)
    def _():
        o_ref[...] = (acc_ref[...] * inv_hw).astype(o_ref.dtype)


def _combined_score_gap_kernel(*refs, num_t, inv_hw):
    # refs = (s_ref, t_ref_0..t_ref_{T-1}, stats_ref, gap_ref, gap_acc)
    #   s_ref      : raw (channel-padded) student tile (N, C, T)
    #   t_ref_k    : raw teacher tiles (N, C, T); dim-0 normalization fused here
    #   stats_ref  : SMEM (3*num_t,) f32 resident across the grid
    #                layout per teacher k: [3k]=sum(s_n*t_n), [3k+2]=sum(t_n^2);
    #                slot [1] holds the shared sum(s_n^2)
    #   gap_ref    : (N, C) student global-avg-pool output (resident across grid)
    #   gap_acc    : VMEM (N, C) f32 scratch accumulator
    s_ref = refs[0]
    t_refs = refs[1:1 + num_t]
    stats_ref = refs[1 + num_t]
    gap_ref = refs[2 + num_t]
    gap_acc = refs[3 + num_t]

    i = pl.program_id(0)

    @pl.when(i == 0)
    def _():
        gap_acc[...] = jnp.zeros_like(gap_acc)
        for k in range(3 * num_t):
            stats_ref[k] = jnp.float32(0.0)

    # Student: read from HBM once per HW tile, normalize in VMEM, fold in the GAP
    # partial sum and the (teacher-independent) sum(s_n^2).
    s = s_ref[...].astype(jnp.float32)
    s_sumsq = jnp.sum(s * s, axis=0, keepdims=True)
    sn = s * jax.lax.rsqrt(jnp.maximum(s_sumsq, EPS_NORMALIZE_SQ))
    gap_acc[...] += jnp.sum(sn, axis=-1)
    stats_ref[1] += jnp.sum(sn * sn)

    # Teachers stream past the resident normalized student tile; t_norm never
    # hits HBM on the scoring path.  (Per-step scalar SMEM accumulation is fine:
    # the kernel is HBM-bound, XLU/scalar slots have slack.)
    for k in range(num_t):
        tv = t_refs[k][...].astype(jnp.float32)
        t_sumsq = jnp.sum(tv * tv, axis=0, keepdims=True)
        tn = tv * jax.lax.rsqrt(jnp.maximum(t_sumsq, EPS_NORMALIZE_SQ))
        stats_ref[3 * k + 0] += jnp.sum(sn * tn)
        stats_ref[3 * k + 2] += jnp.sum(tn * tn)

    @pl.when(i == pl.num_programs(0) - 1)
    def _():
        gap_ref[...] = (gap_acc[...] * inv_hw).astype(gap_ref.dtype)


# ------------------------------ cached builders -------------------------------

@functools.lru_cache(maxsize=None)
def _build_combined_call(num_t, N, C, hw, tile, dtype_name, vmem_limit):
    dtype = jnp.dtype(dtype_name)
    spec = pl.BlockSpec((N, C, tile), lambda i: (0, 0, i))
    call = pl.pallas_call(
        functools.partial(_combined_score_gap_kernel, num_t=num_t, inv_hw=1.0 / hw),
        out_shape=(jax.ShapeDtypeStruct((3 * num_t,), jnp.float32),
                   jax.ShapeDtypeStruct((N, C), dtype)),
        grid=(hw // tile,),
        in_specs=[spec] * (num_t + 1),
        out_specs=(pl.BlockSpec(memory_space=pltpu.MemorySpace.SMEM),
                   pl.BlockSpec((N, C), lambda i: (0, 0))),
        scratch_shapes=[pltpu.VMEM((N, C), jnp.float32)],
        compiler_params=pltpu.CompilerParams(
            dimension_semantics=("arbitrary",),
            vmem_limit_bytes=vmem_limit),
    )
    return jax.jit(call)


@functools.lru_cache(maxsize=None)
def _build_normalize_dim0_call(N, C, hw, tile, dtype_name, vmem_limit):
    dtype = jnp.dtype(dtype_name)
    call = pl.pallas_call(
        _normalize_dim0_kernel,
        out_shape=jax.ShapeDtypeStruct((N, C, hw), dtype),
        grid=(hw // tile,),
        in_specs=[pl.BlockSpec((N, C, tile), lambda i: (0, 0, i))],
        out_specs=pl.BlockSpec((N, C, tile), lambda i: (0, 0, i)),
        compiler_params=pltpu.CompilerParams(
            dimension_semantics=("parallel",),      # independent tiles (megacore-safe)
            vmem_limit_bytes=vmem_limit),
    )
    return jax.jit(call)


@functools.lru_cache(maxsize=None)
def _build_normalize_gap_call(N, C, hw, tile, dtype_name, vmem_limit):
    dtype = jnp.dtype(dtype_name)
    call = pl.pallas_call(
        functools.partial(_normalize_gap_kernel, inv_hw=1.0 / hw),
        out_shape=jax.ShapeDtypeStruct((N, C), dtype),
        grid=(hw // tile,),
        in_specs=[pl.BlockSpec((N, C, tile), lambda i: (0, 0, i))],
        out_specs=pl.BlockSpec((N, C), lambda i: (0, 0)),
        scratch_shapes=[pltpu.VMEM((N, C), jnp.float32)],
        compiler_params=pltpu.CompilerParams(
            dimension_semantics=("arbitrary",),
            vmem_limit_bytes=vmem_limit),
    )
    return jax.jit(call)


# --------------------------------- wrappers -----------------------------------

def combined_score_and_student_gap(s_raw, t_blocks):
    """Fused: dim-0 normalize s in VMEM, its GAP + sum(s_n^2), and the fused
    normalize + cosine stats for every teacher block.
    Returns (stats (3*T,) f32, s_gap (N, C))."""
    N, C, H, W = s_raw.shape
    hw = H * W
    num_t = len(t_blocks)
    budget, vmem_limit = _vmem_budgets()
    isize = jnp.dtype(s_raw.dtype).itemsize
    # (1+T) double-buffered inputs + ~4 f32 temporaries per lane column.
    bytes_per_lane = N * C * (2 * (num_t + 1) * isize + 4 * 4)
    tile = _pick_hw_tile(hw, bytes_per_lane, budget)
    call = _build_combined_call(num_t, N, C, hw, tile,
                                jnp.dtype(s_raw.dtype).name, vmem_limit)
    args = [s_raw.reshape(N, C, hw)] + [t.reshape(N, C, hw) for t in t_blocks]
    stats, s_gap = call(*args)
    return stats, s_gap


def normalize_dim0(x):
    """F.normalize(x, p=2, dim=0) for NCHW x."""
    N, C, H, W = x.shape
    hw = H * W
    budget, vmem_limit = _vmem_budgets()
    isize = jnp.dtype(x.dtype).itemsize
    bytes_per_lane = N * C * (4 * isize + 2 * 4)    # in x2 + out x2 + f32 temps
    tile = _pick_hw_tile(hw, bytes_per_lane, budget)
    call = _build_normalize_dim0_call(N, C, hw, tile, jnp.dtype(x.dtype).name,
                                      vmem_limit)
    return call(x.reshape(N, C, hw)).reshape(N, C, H, W)


def normalize_and_global_avgpool(x):
    """Fused F.normalize(dim=0) + AdaptiveAvgPool2d((1,1)) + flatten -> (N, C)."""
    N, C, H, W = x.shape
    hw = H * W
    budget, vmem_limit = _vmem_budgets()
    isize = jnp.dtype(x.dtype).itemsize
    bytes_per_lane = N * C * (2 * isize + 3 * 4)
    tile = _pick_hw_tile(hw, bytes_per_lane, budget)
    call = _build_normalize_gap_call(N, C, hw, tile, jnp.dtype(x.dtype).name,
                                     vmem_limit)
    return call(x.reshape(N, C, hw))


def avgpool8_flatten(x):
    """nn.AvgPool2d(8) + .view(N, -1) ('resnet' path).
    TODO(synk): 8x8 strided pooling kept as JAX reshape-mean glue; fusing it with
    the dim-0 normalization needs (N*C, H, W) 4-D tiling in Pallas."""
    N, C, H, W = x.shape
    pooled = x.reshape(N, C, H // 8, 8, W // 8, 8).mean(axis=(3, 5))
    return pooled.reshape(N, -1)


def zero_pad_on_filter(inputs, in_filter, out_filter):
    """F.pad on the channel axis, (out-in)//2 on each side (glue, no compute)."""
    pad = (out_filter - in_filter) // 2
    return jnp.pad(inputs, ((0, 0), (pad, pad), (0, 0), (0, 0)))


# -------------------------------- module port ---------------------------------

class SimilarityTransfer:
    """JAX/Pallas port of CIFAR/distiller_zoo/ST.py::SimilarityTransfer (no weights)."""

    def __init__(self, method, model_s):
        self.method = method
        self.model_s = model_s
        if 'vgg' in model_s:
            self._pool_kind = 'vgg'       # AdaptiveAvgPool2d((1,1))
        elif 'resnet' in model_s:
            self._pool_kind = 'resnet'    # AvgPool2d(8)
        else:
            raise NotImplementedError(model_s)

    def forward(self, block_out_s, block_out_t):
        need_simi = self.method in ('Smallest', 'Largest')
        # Phase 1: dispatch every group's fused scoring kernel (no host syncs).
        prepared = [self._prepare_group(s, t, need_simi)
                    for s, t in zip(block_out_s, block_out_t)]
        # Phase 2: ONE batched device->host transfer for all groups' stats.
        if need_simi:
            stats_host = jax.device_get([g['stats'] for g in prepared])
        else:
            stats_host = [None] * len(prepared)
        # Phase 3: winner selection + pooling kernels.
        return [self._finalize_group(g, st) for g, st in zip(prepared, stats_host)]

    def _prepare_group(self, s_blocks, t_blocks, need_simi):
        s_raw = s_blocks[-1]
        for t in t_blocks:
            if s_raw.shape != t.shape:
                # pad-then-normalize == normalize-then-pad for zero channels.
                s_raw = zero_pad_on_filter(s_raw, s_raw.shape[1], t.shape[1])
            assert t.shape == s_raw.shape
        stats = s_gap = None
        if need_simi:
            assert all(t.shape == t_blocks[0].shape for t in t_blocks), \
                'fused scoring kernel expects uniform teacher shapes in a group'
            stats, s_gap = combined_score_and_student_gap(s_raw, t_blocks)
        return {'s_raw': s_raw, 't_blocks': t_blocks, 'stats': stats, 's_gap': s_gap}

    def _finalize_group(self, group, stats_host):
        t_blocks = group['t_blocks']
        if self.method == 'Last':
            max_key = len(t_blocks) - 1
        elif self.method == 'First':
            max_key = 0
        elif self.method == 'Random':
            max_key = random.randint(0, len(t_blocks) - 1)
        elif self.method in ('Smallest', 'Largest'):
            stats = np.asarray(stats_host)
            ss = float(stats[1])
            simi_dict = {}
            for i in range(len(t_blocks)):
                dot = float(stats[3 * i + 0])
                tt = float(stats[3 * i + 2])
                simi_dict[i] = dot / max(math.sqrt(ss) * math.sqrt(tt), EPS_COSINE)
            if self.method == 'Smallest':
                max_key = sorted(simi_dict.items(), key=lambda x: x[1], reverse=True).pop()[0]
            else:  # 'Largest'
                max_key = sorted(simi_dict.items(), key=lambda x: x[1], reverse=False).pop()[0]
        else:
            raise EOFError('method is not correct!')

        t_win = t_blocks[max_key]
        if self._pool_kind == 'vgg':
            s_out = group['s_gap'] if group['s_gap'] is not None \
                else normalize_and_global_avgpool(group['s_raw'])
            t_out = normalize_and_global_avgpool(t_win)   # fused; t_norm never hits HBM
        else:
            s_out = avgpool8_flatten(normalize_dim0(group['s_raw']))
            t_out = avgpool8_flatten(normalize_dim0(t_win))
        return (s_out, t_out)


# ----------------------------------- demo --------------------------------------

def _ref_normalize_dim0(x):
    norm = jnp.sqrt(jnp.sum(x.astype(jnp.float32) ** 2, axis=0, keepdims=True))
    return x / jnp.maximum(norm, EPS_NORMALIZE)


def _ref_avgpool8_flatten(x):
    N, C, H, W = x.shape
    return x.reshape(N, C, H // 8, 8, W // 8, 8).mean(axis=(3, 5)).reshape(N, -1)


def _ref_group_largest_vgg(s_blocks, t_blocks):
    """Pure-JAX reference of st_loss_each_group for method='Largest', vgg pool."""
    s_norm = _ref_normalize_dim0(s_blocks[-1])
    sims = []
    for t in t_blocks:
        t_norm = _ref_normalize_dim0(t)
        if s_norm.shape != t_norm.shape:
            pad = (t_norm.shape[1] - s_norm.shape[1]) // 2
            s_norm = jnp.pad(s_norm, ((0, 0), (pad, pad), (0, 0), (0, 0)))
        num = float(jnp.sum(s_norm * t_norm))
        den = max(float(jnp.sqrt(jnp.sum(s_norm ** 2)) * jnp.sqrt(jnp.sum(t_norm ** 2))),
                  EPS_COSINE)
        sims.append(num / den)
    max_key = sorted(enumerate(sims), key=lambda kv: kv[1], reverse=False).pop()[0]
    t_sel = _ref_normalize_dim0(t_blocks[max_key])
    return jnp.mean(s_norm, axis=(2, 3)), jnp.mean(t_sel, axis=(2, 3))


if __name__ == "__main__":
    random.seed(0)
    key = jax.random.PRNGKey(0)

    # Small shapes: batch=2, channels=4, spatial=16x16.
    N, C, H, W = 2, 4, 16, 16
    n_groups, n_s_blocks, n_t_blocks = 2, 2, 3

    keys = jax.random.split(key, n_groups * (n_s_blocks + n_t_blocks))
    kidx = 0
    block_out_s, block_out_t = [], []
    for _ in range(n_groups):
        s_blocks = [jax.random.normal(keys[kidx + j], (N, C, H, W), jnp.float32)
                    for j in range(n_s_blocks)]
        kidx += n_s_blocks
        t_blocks = [jax.random.normal(keys[kidx + j], (N, C, H, W), jnp.float32)
                    for j in range(n_t_blocks)]
        kidx += n_t_blocks
        block_out_s.append(s_blocks)
        block_out_t.append(t_blocks)

    # --- vgg path, method='Largest' (fused scoring + GAP kernels) ---
    module = SimilarityTransfer(method='Largest', model_s='vgg8')
    layer_pair_list = module.forward(block_out_s, block_out_t)
    for (s_out, t_out), s_blocks, t_blocks in zip(layer_pair_list, block_out_s, block_out_t):
        jax.block_until_ready(s_out)
        jax.block_until_ready(t_out)
        assert s_out.shape == (N, C) and t_out.shape == (N, C)
        s_ref, t_ref = _ref_group_largest_vgg(s_blocks, t_blocks)
        np.testing.assert_allclose(np.asarray(s_out), np.asarray(s_ref), rtol=1e-4, atol=1e-5)
        np.testing.assert_allclose(np.asarray(t_out), np.asarray(t_ref), rtol=1e-4, atol=1e-5)

    # --- resnet path, method='First' (normalize kernel + pooling glue) ---
    module_r = SimilarityTransfer(method='First', model_s='resnet20')
    pairs_r = module_r.forward(block_out_s, block_out_t)
    for (s_out, t_out), s_blocks, t_blocks in zip(pairs_r, block_out_s, block_out_t):
        jax.block_until_ready(s_out)
        jax.block_until_ready(t_out)
        assert s_out.shape == (N, C * (H // 8) * (W // 8))
        s_ref = _ref_avgpool8_flatten(_ref_normalize_dim0(s_blocks[-1]))
        t_ref = _ref_avgpool8_flatten(_ref_normalize_dim0(t_blocks[0]))
        np.testing.assert_allclose(np.asarray(s_out), np.asarray(s_ref), rtol=1e-4, atol=1e-5)
        np.testing.assert_allclose(np.asarray(t_out), np.asarray(t_ref), rtol=1e-4, atol=1e-5)

    print("KERNEL_OK")
</pallas_src>

<mosaic_0001>
module attributes {stable_mosaic.version = 11 : i64} {
  func.func @_combined_score_gap_kernel(%arg0: i32, %arg1: memref<2x4x256xf32, #tpu.memory_space<vmem>>, %arg2: memref<2x4x256xf32, #tpu.memory_space<vmem>>, %arg3: memref<2x4x256xf32, #tpu.memory_space<vmem>>, %arg4: memref<2x4x256xf32, #tpu.memory_space<vmem>>, %arg5: memref<9xf32, #tpu.memory_space<smem>>, %arg6: memref<2x4xf32, #tpu.memory_space<vmem>>, %arg7: memref<2x4xf32, #tpu.memory_space<vmem>>) attributes {dimension_semantics = [#tpu.dimension_semantics<arbitrary>], iteration_bounds = array<i64: 1>, scalar_prefetch = 0 : i64, scratch_operands = 1 : i64, tpu.core_type = #tpu.core_type<tc>, window_params = [{transform_indices = @transform_0, window_bounds = array<i64: 2, 4, 256>}, {transform_indices = @transform_1, window_bounds = array<i64: 2, 4, 256>}, {transform_indices = @transform_2, window_bounds = array<i64: 2, 4, 256>}, {transform_indices = @transform_3, window_bounds = array<i64: 2, 4, 256>}, {transform_indices = @transform_4, window_bounds = array<i64: 9>}, {pipeline_mode = #tpu.pipeline_mode<synchronous>, transform_indices = @transform_5, window_bounds = array<i64: 2, 4>}]} {
    %c0_i32 = arith.constant 0 : i32
    %0 = arith.cmpi eq, %arg0, %c0_i32 : i32
    %1 = arith.extui %0 : i1 to i32
    %c0_i32_0 = arith.constant 0 : i32
    %2 = arith.cmpi ne, %1, %c0_i32_0 : i32
    scf.if %2 {
      %cst_41 = arith.constant 0.000000e+00 : f32
      %102 = vector.broadcast %cst_41 : f32 to vector<2x4xf32>
      %c0_42 = arith.constant 0 : index
      %c0_43 = arith.constant 0 : index
      %103 = vector.load %arg7[%c0_42, %c0_43] : memref<2x4xf32, #tpu.memory_space<vmem>>, vector<2x4xf32>
      tpu.vector_store %arg7[%c0_42, %c0_43], %102 {strides = array<i32>} : memref<2x4xf32, #tpu.memory_space<vmem>>, vector<2x4xf32>,
      %cst_44 = arith.constant 0.000000e+00 : f32
      %c0_45 = arith.constant 0 : index
      %104 = memref.load %arg5[%c0_45] : memref<9xf32, #tpu.memory_space<smem>>
      memref.store %cst_44, %arg5[%c0_45] : memref<9xf32, #tpu.memory_space<smem>>
      %cst_46 = arith.constant 0.000000e+00 : f32
      %c1_47 = arith.constant 1 : index
      %105 = memref.load %arg5[%c1_47] : memref<9xf32, #tpu.memory_space<smem>>
      memref.store %cst_46, %arg5[%c1_47] : memref<9xf32, #tpu.memory_space<smem>>
      %cst_48 = arith.constant 0.000000e+00 : f32
      %c2_49 = arith.constant 2 : index
      %106 = memref.load %arg5[%c2_49] : memref<9xf32, #tpu.memory_space<smem>>
      memref.store %cst_48, %arg5[%c2_49] : memref<9xf32, #tpu.memory_space<smem>>
      %cst_50 = arith.constant 0.000000e+00 : f32
      %c3_51 = arith.constant 3 : index
      %107 = memref.load %arg5[%c3_51] : memref<9xf32, #tpu.memory_space<smem>>
      memref.store %cst_50, %arg5[%c3_51] : memref<9xf32, #tpu.memory_space<smem>>
      %cst_52 = arith.constant 0.000000e+00 : f32
      %c4 = arith.constant 4 : index
      %108 = memref.load %arg5[%c4] : memref<9xf32, #tpu.memory_space<smem>>
      memref.store %cst_52, %arg5[%c4] : memref<9xf32, #tpu.memory_space<smem>>
      %cst_53 = arith.constant 0.000000e+00 : f32
      %c5_54 = arith.constant 5 : index
      %109 = memref.load %arg5[%c5_54] : memref<9xf32, #tpu.memory_space<smem>>
      memref.store %cst_53, %arg5[%c5_54] : memref<9xf32, #tpu.memory_space<smem>>
      %cst_55 = arith.constant 0.000000e+00 : f32
      %c6_56 = arith.constant 6 : index
      %110 = memref.load %arg5[%c6_56] : memref<9xf32, #tpu.memory_space<smem>>
      memref.store %cst_55, %arg5[%c6_56] : memref<9xf32, #tpu.memory_space<smem>>
      %cst_57 = arith.constant 0.000000e+00 : f32
      %c7 = arith.constant 7 : index
      %111 = memref.load %arg5[%c7] : memref<9xf32, #tpu.memory_space<smem>>
      memref.store %cst_57, %arg5[%c7] : memref<9xf32, #tpu.memory_space<smem>>
      %cst_58 = arith.constant 0.000000e+00 : f32
      %c8_59 = arith.constant 8 : index
      %112 = memref.load %arg5[%c8_59] : memref<9xf32, #tpu.memory_space<smem>>
      memref.store %cst_58, %arg5[%c8_59] : memref<9xf32, #tpu.memory_space<smem>>
    } else {
    }
    %c0 = arith.constant 0 : index
    %c0_1 = arith.constant 0 : index
    %c0_2 = arith.constant 0 : index
    %3 = vector.load %arg1[%c0, %c0_1, %c0_2] : memref<2x4x256xf32, #tpu.memory_space<vmem>>, vector<2x4x256xf32>
    %4 = arith.mulf %3, %3 : vector<2x4x256xf32>
    %cst = arith.constant dense<0.000000e+00> : vector<4x256xf32>
    %5 = vector.multi_reduction <add>, %4, %cst [0] : vector<2x4x256xf32> to vector<4x256xf32>
    %6 = vector.shape_cast %5 : vector<4x256xf32> to vector<1x4x256xf32>
    %cst_3 = arith.constant 1.000000e-24 : f32
    %7 = vector.broadcast %cst_3 : f32 to vector<1x4x256xf32>
    %8 = arith.maximumf %6, %7 : vector<1x4x256xf32>
    %9 = math.rsqrt %8 : vector<1x4x256xf32>
    %10 = vector.broadcast %9 : vector<1x4x256xf32> to vector<2x4x256xf32>
    %11 = arith.mulf %3, %10 : vector<2x4x256xf32>
    %c0_4 = arith.constant 0 : index
    %c0_5 = arith.constant 0 : index
    %12 = vector.load %arg7[%c0_4, %c0_5] : memref<2x4xf32, #tpu.memory_space<vmem>>, vector<2x4xf32>
    %cst_6 = arith.constant dense<0.000000e+00> : vector<2x4xf32>
    %13 = vector.multi_reduction <add>, %11, %cst_6 [2] : vector<2x4x256xf32> to vector<2x4xf32>
    %14 = arith.addf %12, %13 : vector<2x4xf32>
    %c0_7 = arith.constant 0 : index
    %c0_8 = arith.constant 0 : index
    %15 = vector.load %arg7[%c0_7, %c0_8] : memref<2x4xf32, #tpu.memory_space<vmem>>, vector<2x4xf32>
    tpu.vector_store %arg7[%c0_7, %c0_8], %14 {strides = array<i32>} : memref<2x4xf32, #tpu.memory_space<vmem>>, vector<2x4xf32>,
    %c1 = arith.constant 1 : index
    %16 = memref.load %arg5[%c1] : memref<9xf32, #tpu.memory_space<smem>>
    %17 = arith.mulf %11, %11 : vector<2x4x256xf32>
    %18 = vector.shape_cast %17 : vector<2x4x256xf32> to vector<1x2x4x256xf32>
    %cst_9 = arith.constant dense<0.000000e+00> : vector<1xf32>
    %19 = vector.multi_reduction <add>, %18, %cst_9 [1, 2, 3] : vector<1x2x4x256xf32> to vector<1xf32>
    %20 = vector.shape_cast %19 : vector<1xf32> to vector<1x1x1x1xf32>
    %21 = vector.extract %20[0, 0, 0, 0] : f32 from vector<1x1x1x1xf32>
    %22 = arith.addf %16, %21 : f32
    %c1_10 = arith.constant 1 : index
    %23 = memref.load %arg5[%c1_10] : memref<9xf32, #tpu.memory_space<smem>>
    memref.store %22, %arg5[%c1_10] : memref<9xf32, #tpu.memory_space<smem>>
    %c0_11 = arith.constant 0 : index
    %c0_12 = arith.constant 0 : index
    %c0_13 = arith.constant 0 : index
    %24 = vector.load %arg2[%c0_11, %c0_12, %c0_13] : memref<2x4x256xf32, #tpu.memory_space<vmem>>, vector<2x4x256xf32>
    %25 = arith.mulf %24, %24 : vector<2x4x256xf32>
    %cst_14 = arith.constant dense<0.000000e+00> : vector<4x256xf32>
    %26 = vector.multi_reduction <add>, %25, %cst_14 [0] : vector<2x4x256xf32> to vector<4x256xf32>
    %27 = vector.shape_cast %26 : vector<4x256xf32> to vector<1x4x256xf32>
    %cst_15 = arith.constant 1.000000e-24 : f32
    %28 = vector.broadcast %cst_15 : f32 to vector<1x4x256xf32>
    %29 = arith.maximumf %27, %28 : vector<1x4x256xf32>
    %30 = math.rsqrt %29 : vector<1x4x256xf32>
    %31 = vector.broadcast %30 : vector<1x4x256xf32> to vector<2x4x256xf32>
    %32 = arith.mulf %24, %31 : vector<2x4x256xf32>
    %c0_16 = arith.constant 0 : index
    %33 = memref.load %arg5[%c0_16] : memref<9xf32, #tpu.memory_space<smem>>
    %34 = arith.mulf %11, %32 : vector<2x4x256xf32>
    %35 = vector.shape_cast %34 : vector<2x4x256xf32> to vector<1x2x4x256xf32>
    %cst_17 = arith.constant dense<0.000000e+00> : vector<1xf32>
    %36 = vector.multi_reduction <add>, %35, %cst_17 [1, 2, 3] : vector<1x2x4x256xf32> to vector<1xf32>
    %37 = vector.shape_cast %36 : vector<1xf32> to vector<1x1x1x1xf32>
    %38 = vector.extract %37[0, 0, 0, 0] : f32 from vector<1x1x1x1xf32>
    %39 = arith.addf %33, %38 : f32
    %c0_18 = arith.constant 0 : index
    %40 = memref.load %arg5[%c0_18] : memref<9xf32, #tpu.memory_space<smem>>
    memref.store %39, %arg5[%c0_18] : memref<9xf32, #tpu.memory_space<smem>>
    %c2 = arith.constant 2 : index
    %41 = memref.load %arg5[%c2] : memref<9xf32, #tpu.memory_space<smem>>
    %42 = arith.mulf %32, %32 : vector<2x4x256xf32>
    %43 = vector.shape_cast %42 : vector<2x4x256xf32> to vector<1x2x4x256xf32>
    %cst_19 = arith.constant dense<0.000000e+00> : vector<1xf32>
    %44 = vector.multi_reduction <add>, %43, %cst_19 [1, 2, 3] : vector<1x2x4x256xf32> to vector<1xf32>
    %45 = vector.shape_cast %44 : vector<1xf32> to vector<1x1x1x1xf32>
    %46 = vector.extract %45[0, 0, 0, 0] : f32 from vector<1x1x1x1xf32>
    %47 = arith.addf %41, %46 : f32
    %c2_20 = arith.constant 2 : index
    %48 = memref.load %arg5[%c2_20] : memref<9xf32, #tpu.memory_space<smem>>
    memref.store %47, %arg5[%c2_20] : memref<9xf32, #tpu.memory_space<smem>>
    %c0_21 = arith.constant 0 : index
    %c0_22 = arith.constant 0 : index
    %c0_23 = arith.constant 0 : index
    %49 = vector.load %arg3[%c0_21, %c0_22, %c0_23] : memref<2x4x256xf32, #tpu.memory_space<vmem>>, vector<2x4x256xf32>
    %50 = arith.mulf %49, %49 : vector<2x4x256xf32>
    %cst_24 = arith.constant dense<0.000000e+00> : vector<4x256xf32>
    %51 = vector.multi_reduction <add>, %50, %cst_24 [0] : vector<2x4x256xf32> to vector<4x256xf32>
    %52 = vector.shape_cast %51 : vector<4x256xf32> to vector<1x4x256xf32>
    %cst_25 = arith.constant 1.000000e-24 : f32
    %53 = vector.broadcast %cst_25 : f32 to vector<1x4x256xf32>
    %54 = arith.maximumf %52, %53 : vector<1x4x256xf32>
    %55 = math.rsqrt %54 : vector<1x4x256xf32>
    %56 = vector.broadcast %55 : vector<1x4x256xf32> to vector<2x4x256xf32>
    %57 = arith.mulf %49, %56 : vector<2x4x256xf32>
    %c3 = arith.constant 3 : index
    %58 = memref.load %arg5[%c3] : memref<9xf32, #tpu.memory_space<smem>>
    %59 = arith.mulf %11, %57 : vector<2x4x256xf32>
    %60 = vector.shape_cast %59 : vector<2x4x256xf32> to vector<1x2x4x256xf32>
    %cst_26 = arith.constant dense<0.000000e+00> : vector<1xf32>
    %61 = vector.multi_reduction <add>, %60, %cst_26 [1, 2, 3] : vector<1x2x4x256xf32> to vector<1xf32>
    %62 = vector.shape_cast %61 : vector<1xf32> to vector<1x1x1x1xf32>
    %63 = vector.extract %62[0, 0, 0, 0] : f32 from vector<1x1x1x1xf32>
    %64 = arith.addf %58, %63 : f32
    %c3_27 = arith.constant 3 : index
    %65 = memref.load %arg5[%c3_27] : memref<9xf32, #tpu.memory_space<smem>>
    memref.store %64, %arg5[%c3_27] : memref<9xf32, #tpu.memory_space<smem>>
    %c5 = arith.constant 5 : index
    %66 = memref.load %arg5[%c5] : memref<9xf32, #tpu.memory_space<smem>>
    %67 = arith.mulf %57, %57 : vector<2x4x256xf32>
    %68 = vector.shape_cast %67 : vector<2x4x256xf32> to vector<1x2x4x256xf32>
    %cst_28 = arith.constant dense<0.000000e+00> : vector<1xf32>
    %69 = vector.multi_reduction <add>, %68, %cst_28 [1, 2, 3] : vector<1x2x4x256xf32> to vector<1xf32>
    %70 = vector.shape_cast %69 : vector<1xf32> to vector<1x1x1x1xf32>
    %71 = vector.extract %70[0, 0, 0, 0] : f32 from vector<1x1x1x1xf32>
    %72 = arith.addf %66, %71 : f32
    %c5_29 = arith.constant 5 : index
    %73 = memref.load %arg5[%c5_29] : memref<9xf32, #tpu.memory_space<smem>>
    memref.store %72, %arg5[%c5_29] : memref<9xf32, #tpu.memory_space<smem>>
    %c0_30 = arith.constant 0 : index
    %c0_31 = arith.constant 0 : index
    %c0_32 = arith.constant 0 : index
    %74 = vector.load %arg4[%c0_30, %c0_31, %c0_32] : memref<2x4x256xf32, #tpu.memory_space<vmem>>, vector<2x4x256xf32>
    %75 = arith.mulf %74, %74 : vector<2x4x256xf32>
    %cst_33 = arith.constant dense<0.000000e+00> : vector<4x256xf32>
    %76 = vector.multi_reduction <add>, %75, %cst_33 [0] : vector<2x4x256xf32> to vector<4x256xf32>
    %77 = vector.shape_cast %76 : vector<4x256xf32> to vector<1x4x256xf32>
    %cst_34 = arith.constant 1.000000e-24 : f32
    %78 = vector.broadcast %cst_34 : f32 to vector<1x4x256xf32>
    %79 = arith.maximumf %77, %78 : vector<1x4x256xf32>
    %80 = math.rsqrt %79 : vector<1x4x256xf32>
    %81 = vector.broadcast %80 : vector<1x4x256xf32> to vector<2x4x256xf32>
    %82 = arith.mulf %74, %81 : vector<2x4x256xf32>
    %c6 = arith.constant 6 : index
    %83 = memref.load %arg5[%c6] : memref<9xf32, #tpu.memory_space<smem>>
    %84 = arith.mulf %11, %82 : vector<2x4x256xf32>
    %85 = vector.shape_cast %84 : vector<2x4x256xf32> to vector<1x2x4x256xf32>
    %cst_35 = arith.constant dense<0.000000e+00> : vector<1xf32>
    %86 = vector.multi_reduction <add>, %85, %cst_35 [1, 2, 3] : vector<1x2x4x256xf32> to vector<1xf32>
    %87 = vector.shape_cast %86 : vector<1xf32> to vector<1x1x1x1xf32>
    %88 = vector.extract %87[0, 0, 0, 0] : f32 from vector<1x1x1x1xf32>
    %89 = arith.addf %83, %88 : f32
    %c6_36 = arith.constant 6 : index
    %90 = memref.load %arg5[%c6_36] : memref<9xf32, #tpu.memory_space<smem>>
    memref.store %89, %arg5[%c6_36] : memref<9xf32, #tpu.memory_space<smem>>
    %c8 = arith.constant 8 : index
    %91 = memref.load %arg5[%c8] : memref<9xf32, #tpu.memory_space<smem>>
    %92 = arith.mulf %82, %82 : vector<2x4x256xf32>
    %93 = vector.shape_cast %92 : vector<2x4x256xf32> to vector<1x2x4x256xf32>
    %cst_37 = arith.constant dense<0.000000e+00> : vector<1xf32>
    %94 = vector.multi_reduction <add>, %93, %cst_37 [1, 2, 3] : vector<1x2x4x256xf32> to vector<1xf32>
    %95 = vector.shape_cast %94 : vector<1xf32> to vector<1x1x1x1xf32>
    %96 = vector.extract %95[0, 0, 0, 0] : f32 from vector<1x1x1x1xf32>
    %97 = arith.addf %91, %96 : f32
    %c8_38 = arith.constant 8 : index
    %98 = memref.load %arg5[%c8_38] : memref<9xf32, #tpu.memory_space<smem>>
    memref.store %97, %arg5[%c8_38] : memref<9xf32, #tpu.memory_space<smem>>
    %c0_i32_39 = arith.constant 0 : i32
    %99 = arith.cmpi eq, %arg0, %c0_i32_39 : i32
    %100 = arith.extui %99 : i1 to i32
    %c0_i32_40 = arith.constant 0 : i32
    %101 = arith.cmpi ne, %100, %c0_i32_40 : i32
    scf.if %101 {
      %c0_41 = arith.constant 0 : index
      %c0_42 = arith.constant 0 : index
      %102 = vector.load %arg7[%c0_41, %c0_42] : memref<2x4xf32, #tpu.memory_space<vmem>>, vector<2x4xf32>
      %cst_43 = arith.constant 3.906250e-03 : f32
      %103 = vector.broadcast %cst_43 : f32 to vector<2x4xf32>
      %104 = arith.mulf %102, %103 : vector<2x4xf32>
      %c0_44 = arith.constant 0 : index
      %c0_45 = arith.constant 0 : index
      %105 = vector.load %arg6[%c0_44, %c0_45] : memref<2x4xf32, #tpu.memory_space<vmem>>, vector<2x4xf32>
      tpu.vector_store %arg6[%c0_44, %c0_45], %104 {strides = array<i32>} : memref<2x4xf32, #tpu.memory_space<vmem>>, vector<2x4xf32>,
    } else {
    }
    return
  }
  func.func @transform_0(%arg0: i32) -> (i32, i32, i32) {
    %c0_i32 = arith.constant 0 : i32
    %c0_i32_0 = arith.constant 0 : i32
    %c0_i32_1 = arith.constant 0 : i32
    return %c0_i32, %c0_i32_0, %arg0 : i32, i32, i32
  }
  func.func @transform_1(%arg0: i32) -> (i32, i32, i32) {
    %c0_i32 = arith.constant 0 : i32
    %c0_i32_0 = arith.constant 0 : i32
    %c0_i32_1 = arith.constant 0 : i32
    return %c0_i32, %c0_i32_0, %arg0 : i32, i32, i32
  }
  func.func @transform_2(%arg0: i32) -> (i32, i32, i32) {
    %c0_i32 = arith.constant 0 : i32
    %c0_i32_0 = arith.constant 0 : i32
    %c0_i32_1 = arith.constant 0 : i32
    return %c0_i32, %c0_i32_0, %arg0 : i32, i32, i32
  }
  func.func @transform_3(%arg0: i32) -> (i32, i32, i32) {
    %c0_i32 = arith.constant 0 : i32
    %c0_i32_0 = arith.constant 0 : i32
    %c0_i32_1 = arith.constant 0 : i32
    return %c0_i32, %c0_i32_0, %arg0 : i32, i32, i32
  }
  func.func @transform_4(%arg0: i32) -> i32 {
    %c0_i32 = arith.constant 0 : i32
    %c0_i32_0 = arith.constant 0 : i32
    return %c0_i32 : i32
  }
  func.func @transform_5(%arg0: i32) -> (i32, i32) {
    %c0_i32 = arith.constant 0 : i32
    %c0_i32_0 = arith.constant 0 : i32
    %c0_i32_1 = arith.constant 0 : i32
    return %c0_i32, %c0_i32_0 : i32, i32
  }
}

</mosaic_0001>

<bundles_post_ra>
// kernel: tpu_custom_call.1
= control target key start
LH: loop header
LB: loop body
LE: loop exit
PB: predicated region body
PF: predicated region fallthrough
CT: control target
= control target key end

     0   :  { %11 = vsyncpa [#allocation4], 0  ;;  %s897_s0 = inlined_call_operand.hbm [shape: f32[2,4,256], index: 0, kind: input, shape index: {}]   ;;  %s898_s1 = inlined_call_operand.hbm [shape: f32[2,4,256], index: 1, kind: input, shape index: {}]   ;;  %s899_s2 = inlined_call_operand.hbm [shape: f32[2,4,256], index: 2, kind: input, shape index: {}]   ;;  %s900_s3 = inlined_call_operand.hbm [shape: f32[2,4,256], index: 3, kind: input, shape index: {}]   ;;  %s901_s4 = inlined_call_operand.hbm [shape: f32[9], index: 4, kind: output, shape index: {0}]   ;;  %s902_s5 = inlined_call_operand.hbm [shape: f32[2,4], index: 5, kind: output, shape index: {1}]  }
   0x1   :  { %12 = vsyncpa [#allocation8], 0 }
   0x2   :  { %13 = vsyncpa [#allocation11], 0 }
   0x3   :  { %14 = vsyncpa [#allocation6], 0 }
   0x4   :  { %15 = vsyncpa [#allocation5], 0  ;;  %s648_s18 = smov [#allocation7]   ;;  %s649_s20 = smov [#allocation3]  }
   0x5   :  { %s33_s19 = sshll.u32 %s648_s18, 4  ;;  %s21_s21 = sshll.u32 %s649_s20, 4  ;;  %s34_s19 = int_to_ptr.vmem [resolvable:$true] %s33_s19  ;;  %s688_s21 = int_to_ptr.vmem [resolvable:$true] %s21_s21 }
   0x6   :  { %s518_s24 = scalar_lea.hbm %s898_s1, 256 }
   0x7   :  { %p519_p0 = scmp.ne.s32.totalorder %s898_s1, %s518_s24  ;;  %p522_p1 = scmp.lt.u32.totalorder %s518_s24, %s898_s1 }
   0x9   :  { %p524_p2 = pnand %p522_p1, %p519_p0 }
   0xb   :  { %527 = shalt.err (!%p524_p2)
}
   0xc   :  { %s528_s29 = scalar_lea.vmem %s34_s19, 256  ;;  %p533_p4 = scmp.lt.s32.totalorder %s34_s19, %s34_s19 }
   0xd   :  { %p529_p3 = scmp.ne.s32.totalorder %s34_s19, %s528_s29  ;;  %p534_p5 = scmp.lt.s32.totalorder %s528_s29, %s528_s29 }
   0xf   :  { %p535_p6 = por %p534_p5, %p533_p4 }
  0x11   :  { %p536_p7 = pnand %p535_p6, %p529_p3 }
  0x13   :  { %539 = shalt.err (!%p536_p7)
}
  0x14   :  { %s650_s30 = smov 128   ;;  %s651_s6 = smov 8  }
  0x15   :  { %39 = dma.hbm_to_vmem [thread:$0]  %s898_s1, 256, %s34_s19, [#allocation8], %s650_s30, %s650_s30, %s651_s6  }
  0x16   :  { %s540_s11 = scalar_lea.hbm %s897_s0, 256 }
  0x17   :  { %p541_p8 = scmp.ne.s32.totalorder %s897_s0, %s540_s11  ;;  %p544_p9 = scmp.lt.u32.totalorder %s540_s11, %s897_s0 }
  0x19   :  { %p546_p10 = pnand %p544_p9, %p541_p8 }
  0x1b   :  { %549 = shalt.err (!%p546_p10)
}
  0x1c   :  { %s550_s16 = scalar_lea.vmem %s688_s21, 256  ;;  %p555_p12 = scmp.lt.s32.totalorder %s688_s21, %s688_s21 }
  0x1d   :  { %p551_p11 = scmp.ne.s32.totalorder %s688_s21, %s550_s16  ;;  %p556_p13 = scmp.lt.s32.totalorder %s550_s16, %s550_s16 }
  0x1f   :  { %p557_p0 = por %p556_p13, %p555_p12 }
  0x21   :  { %p558_p1 = pnand %p557_p0, %p551_p11 }
  0x23   :  { %561 = shalt.err (!%p558_p1)
}
  0x24   :  { %27 = dma.hbm_to_vmem [thread:$0]  %s897_s0, 256, %s688_s21, [#allocation4], %s650_s30, %s650_s30, %s651_s6  }
  0x25   :  { %s652_s18 = smov [#allocation9]   ;;  %s653_s20 = smov [#allocation10]  }
  0x26   :  { %s45_s19 = sshll.u32 %s652_s18, 4  ;;  %s57_s22 = sshll.u32 %s653_s20, 4  ;;  %s46_s19 = int_to_ptr.vmem [resolvable:$true] %s45_s19  ;;  %s725_s22 = int_to_ptr.vmem [resolvable:$true] %s57_s22 }
  0x27   :  { %s562_s25 = scalar_lea.hbm %s899_s2, 256 }
  0x28   :  { %p563_p2 = scmp.ne.s32.totalorder %s899_s2, %s562_s25  ;;  %p566_p3 = scmp.lt.u32.totalorder %s562_s25, %s899_s2 }
  0x2a   :  { %p568_p4 = pnand %p566_p3, %p563_p2 }
  0x2c   :  { %571 = shalt.err (!%p568_p4)
}
  0x2d   :  { %s572_s0 = scalar_lea.vmem %s46_s19, 256  ;;  %p577_p6 = scmp.lt.s32.totalorder %s46_s19, %s46_s19 }
  0x2e   :  { %p573_p5 = scmp.ne.s32.totalorder %s46_s19, %s572_s0  ;;  %p578_p7 = scmp.lt.s32.totalorder %s572_s0, %s572_s0 }
  0x30   :  { %p579_p8 = por %p578_p7, %p577_p6 }
  0x32   :  { %p580_p9 = pnand %p579_p8, %p573_p5 }
  0x34   :  { %583 = shalt.err (!%p580_p9)
}
  0x35   :  { %51 = dma.hbm_to_vmem [thread:$0]  %s899_s2, 256, %s46_s19, [#allocation8], %s650_s30, %s650_s30, %s651_s6  }
  0x36   :  { %s584_s10 = scalar_lea.hbm %s900_s3, 256 }
  0x37   :  { %p585_p10 = scmp.ne.s32.totalorder %s900_s3, %s584_s10  ;;  %p588_p11 = scmp.lt.u32.totalorder %s584_s10, %s900_s3 }
  0x39   :  { %p590_p12 = pnand %p588_p11, %p585_p10 }
  0x3b   :  { %593 = shalt.err (!%p590_p12)
}
  0x3c   :  { %s594_s15 = scalar_lea.vmem %s725_s22, 256  ;;  %p599_p0 = scmp.lt.s32.totalorder %s725_s22, %s725_s22 }
  0x3d   :  { %p595_p13 = scmp.ne.s32.totalorder %s725_s22, %s594_s15  ;;  %p600_p1 = scmp.lt.s32.totalorder %s594_s15, %s594_s15 }
  0x3f   :  { %p601_p2 = por %p600_p1, %p599_p0 }
  0x41   :  { %p602_p3 = pnand %p601_p2, %p595_p13 }
  0x43   :  { %605 = shalt.err (!%p602_p3)
}
  0x44   :  { %63 = dma.hbm_to_vmem [thread:$0]  %s900_s3, 256, %s725_s22, [#allocation11], %s650_s30, %s650_s30, %s651_s6  }
  0x45   :  { %638 = dma.done.wait [#allocation4], 256  }
  0x46   :  { %639 = vsyncadd [#allocation4], 4294967040 }
  0x47   :  { %640 = dma.done.wait [#allocation8], 512  }
  0x48   :  { %641 = vsyncadd [#allocation8], 4294966784 }
  0x49   :  { %642 = dma.done.wait [#allocation11], 256  }
  0x4a   :  { %643 = vsyncadd [#allocation11], 4294967040  ;;  %vm110_vm0 = vcmask 1043456   ;;  %v762_v0 = vld [vmem:[#allocation7] sm:$0xff]  ;;  %v764_v1 = vld [vmem:[#allocation7 + $0x8] sm:$0xff]  ;;  %s654_s3 = smov 0.0  }
  0x4b   :  { %v766_v2 = vld [vmem:[#allocation3] sm:$0xff]  ;;  %v192_v3 = vmul.f32 %v762_v0, %v762_v0  ;;  %v193_v4 = vmul.f32 %v764_v1, %v764_v1  ;;  %v772_v5 = vld [vmem:[#allocation3 + $0x8] sm:$0xff]  ;;  %v793_v28 = vld [vmem:[#allocation10] sm:$0xff]  ;;  %91 = sst [smem:[#allocation12 + $0x4]] %s654_s3  ;;  %vm80_vm1 = vcmask 25600   ;;  %vm156_vm2 = vcmask 1041409  }
  0x4c   :  { %v102_v6 = vmul.f32 %v766_v2, %v766_v2  ;;  %v776_v7 = vld [vmem:[#allocation9] sm:$0xff]  ;;  %v778_v8 = vld [vmem:[#allocation9 + $0x8] sm:$0xff]  ;;  %v103_v9 = vmul.f32 %v772_v5, %v772_v5  ;;  %v798_v33 = vld [vmem:[#allocation10 + $0x8] sm:$0xff]  ;;  %v356_v40 = vmul.f32 %v793_v28, %v793_v28  ;;  %97 = sst [smem:[#allocation12 + $0x7]] %s654_s3  ;;  %s656_s30 = smov [#allocation13]  }
  0x4d   :  { %v274_v10 = vmul.f32 %v776_v7, %v776_v7  ;;  %v275_v11 = vmul.f32 %v778_v8, %v778_v8  ;;  %v196_v12 = vcombine.high %v192_v3, %v192_v3  ;;  %v197_v13 = vcombine.high %v193_v4, %v193_v4  ;;  %s456_s6 = sshll.u32 %s656_s30, 4  ;;  %s457_s6 = int_to_ptr.vmem [resolvable:$true] %s456_s6 }
  0x4e   :  { %v200_v14 = vsel %vm110_vm0, %v192_v3, 0.0  ;;  %v201_v15 = vsel %vm110_vm0, %v193_v4, 0.0  ;;  %v106_v17 = vcombine.high %v102_v6, %v102_v6  ;;  %v107_v18 = vcombine.high %v103_v9, %v103_v9  ;;  %s606_s1 = scalar_lea.vmem %s457_s6, 32  ;;  %p611_p5 = scmp.lt.s32.totalorder %s457_s6, %s457_s6 }
  0x4f   :  { %v202_v16 = vadd.f32 %v201_v15, %v200_v14  ;;  %v111_v19 = vsel %vm110_vm0, %v102_v6, 0.0  ;;  %v203_v20 = vsel %vm110_vm0, %v196_v12, 0.0  ;;  %v204_v21 = vsel %vm110_vm0, %v197_v13, 0.0  ;;  %p607_p4 = scmp.ne.s32.totalorder %s457_s6, %s606_s1  ;;  %p612_p6 = scmp.lt.s32.totalorder %s606_s1, %s606_s1 }
  0x50   :  { %v112_v22 = vsel %vm110_vm0, %v103_v9, 0.0  ;;  %v278_v23 = vcombine.high %v274_v10, %v274_v10  ;;  %v205_v24 = vadd.f32 %v204_v21, %v203_v20  ;;  %v114_v27 = vsel %vm110_vm0, %v106_v17, 0.0 }
  0x51   :  { %v206_v25 = vmax.f32 %v202_v16, 1e-24  ;;  %v113_v26 = vadd.f32 %v112_v22, %v111_v19  ;;  %v115_v29 = vsel %vm110_vm0, %v107_v18, 0.0  ;;  %v279_v30 = vcombine.high %v275_v11, %v275_v11  ;;  %p613_p7 = por %p612_p6, %p611_p5 }
  0x52   :  { %v282_v31 = vsel %vm110_vm0, %v274_v10, 0.0  ;;  %v283_v32 = vsel %vm110_vm0, %v275_v11, 0.0  ;;  %v207_v34 = vmax.f32 %v205_v24, 1e-24  ;;  %v116_v35 = vadd.f32 %v115_v29, %v114_v27 }
  0x53   :  { %502 = vrsqrt.f32 %v206_v25  ;;  %v117_v36 = vmax.f32 %v113_v26, 1e-24  ;;  %v284_v37 = vadd.f32 %v283_v32, %v282_v31  ;;  %v285_v38 = vsel %vm110_vm0, %v278_v23, 0.0  ;;  %p614_p8 = pnand %p613_p7, %p607_p4 }
  0x54   :  { %v286_v39 = vsel %vm110_vm0, %v279_v30, 0.0  ;;  %504 = vrsqrt.f32 %v207_v34  ;;  %v118_v41 = vmax.f32 %v116_v35, 1e-24  ;;  %v357_v43 = vmul.f32 %v798_v33, %v798_v33 }
  0x55   :  { %v287_v42 = vadd.f32 %v286_v39, %v285_v38  ;;  %506 = vrsqrt.f32 %v117_v36  ;;  %v288_v44 = vmax.f32 %v284_v37, 1e-24  ;;  %v360_v45 = vcombine.high %v356_v40, %v356_v40 }
  0x56   :  { %v364_v46 = vsel %vm110_vm0, %v356_v40, 0.0  ;;  %508 = vrsqrt.f32 %v118_v41  ;;  %v361_v48 = vcombine.high %v357_v43, %v357_v43  ;;  %v365_v49 = vsel %vm110_vm0, %v357_v43, 0.0 }
  0x57   :  { %v289_v47 = vmax.f32 %v287_v42, 1e-24  ;;  %510 = vrsqrt.f32 %v288_v44  ;;  %v367_v50 = vsel %vm110_vm0, %v360_v45, 0.0  ;;  %v366_v51 = vadd.f32 %v365_v49, %v364_v46 }
  0x58   :  { %v368_v52 = vsel %vm110_vm0, %v361_v48, 0.0 }
  0x59   :  { %512 = vrsqrt.f32 %v289_v47  ;;  %v369_v53 = vadd.f32 %v368_v52, %v367_v50  ;;  %v370_v55 = vmax.f32 %v366_v51, 1e-24 }
  0x5b   :  { %v371_v56 = vmax.f32 %v369_v53, 1e-24  ;;  %514 = vrsqrt.f32 %v370_v55 }
  0x5d   :  { %v503_v54 = vpop.eup %502  ;;  %516 = vrsqrt.f32 %v371_v56 }
  0x5e   :  { %v505_v57 = vpop.eup %504 }
  0x5f   :  { %v507_v58 = vpop.eup %506  ;;  %v212_v59 = vcombine.low %v503_v54, %v505_v57 }
  0x60   :  { %v509_v60 = vpop.eup %508 }
  0x61   :  { %v511_v61 = vpop.eup %510  ;;  %v214_v62 = vmul.f32 %v212_v59, %v762_v0  ;;  %v215_v63 = vmul.f32 %v212_v59, %v764_v1  ;;  %v123_v3 = vcombine.low %v507_v58, %v509_v60 }
  0x63   :  { %v513_v4 = vpop.eup %512  ;;  %v245_v6 = vmul.f32 %v214_v62, %v214_v62  ;;  %v246_v9 = vmul.f32 %v215_v63, %v215_v63  ;;  %v813_v10 = vmul.f32 %v123_v3, %v766_v2  ;;  %v816_v11 = vmul.f32 %v123_v3, %v772_v5 }
  0x64   :  { %v294_v12 = vcombine.low %v511_v61, %v513_v4 }
  0x65   :  { %v249_v13 = vcombine.high %v245_v6, %v245_v6  ;;  %v250_v14 = vcombine.high %v246_v9, %v246_v9  ;;  %v253_v15 = vsel %vm110_vm0, %v245_v6, 0.0  ;;  %v256_v0 = vsel %vm110_vm0, %v246_v9, 0.0  ;;  %v515_v27 = vpop.eup %514 }
  0x66   :  { %v163_v1 = vmul.f32 %v813_v10, %v813_v10  ;;  %v164_v16 = vmul.f32 %v816_v11, %v816_v11  ;;  %v296_v17 = vmul.f32 %v294_v12, %v776_v7  ;;  %v297_v2 = vmul.f32 %v294_v12, %v778_v8 }
  0x67   :  { %v254_v5 = vsel %vm110_vm0, %v249_v13, 0.0  ;;  %v258_v18 = vsel %vm110_vm0, %v250_v14, 0.0  ;;  %v217_v19 = vmul.f32 %v214_v62, %v813_v10  ;;  %v218_v20 = vmul.f32 %v215_v63, %v816_v11  ;;  %v517_v34 = vpop.eup %516 }
  0x68   :  { %v255_v21 = vadd.f32 %v254_v5, %v253_v15  ;;  %v167_v22 = vcombine.high %v163_v1, %v163_v1  ;;  %v168_v23 = vcombine.high %v164_v16, %v164_v16  ;;  %v171_v24 = vsel %vm110_vm0, %v163_v1, 0.0 }
  0x69   :  { %v174_v25 = vsel %vm110_vm0, %v164_v16, 0.0  ;;  %v299_v26 = vmul.f32 %v296_v17, %v813_v10  ;;  %v300_v7 = vmul.f32 %v297_v2, %v816_v11  ;;  %v221_v8 = vcombine.high %v217_v19, %v217_v19 }
  0x6a   :  { %v257_v29 = vadd.f32 %v256_v0, %v255_v21  ;;  %v172_v30 = vsel %vm110_vm0, %v167_v22, 0.0  ;;  %v176_v31 = vsel %vm110_vm0, %v168_v23, 0.0  ;;  %v222_v32 = vcombine.high %v218_v20, %v218_v20 }
  0x6b   :  { %v173_v35 = vadd.f32 %v172_v30, %v171_v24  ;;  %v303_v36 = vcombine.high %v299_v26, %v299_v26  ;;  %v304_v37 = vcombine.high %v300_v7, %v300_v7  ;;  %v307_v38 = vsel %vm110_vm0, %v299_v26, 0.0 }
  0x6c   :  { %v259_v39 = vadd.f32 %v258_v18, %v257_v29  ;;  %v310_v40 = vsel %vm110_vm0, %v300_v7, 0.0  ;;  %v225_v41 = vsel %vm110_vm0, %v217_v19, 0.0  ;;  %v226_v42 = vsel %vm110_vm0, %v221_v8, 0.0 }
  0x6d   :  { %v175_v43 = vadd.f32 %v174_v25, %v173_v35  ;;  %v308_v44 = vsel %vm110_vm0, %v303_v36, 0.0  ;;  %v312_v45 = vsel %vm110_vm0, %v304_v37, 0.0  ;;  %v227_v46 = vadd.f32 %v226_v42, %v225_v41 }
  0x6e   :  { %260 = vadd.xlane.f32.xlu1 %v259_v39  ;;  %v309_v47 = vadd.f32 %v308_v44, %v307_v38  ;;  %v228_v48 = vsel %vm110_vm0, %v218_v20, 0.0  ;;  %v230_v49 = vsel %vm110_vm0, %v222_v32, 0.0  ;;  %v376_v50 = vcombine.low %v515_v27, %v517_v34 }
  0x6f   :  { %v177_v51 = vadd.f32 %v176_v31, %v175_v43  ;;  %v229_v52 = vadd.f32 %v228_v48, %v227_v46  ;;  %v327_v53 = vmul.f32 %v296_v17, %v296_v17  ;;  %v328_v54 = vmul.f32 %v297_v2, %v297_v2 }
  0x70   :  { %v311_v55 = vadd.f32 %v310_v40, %v309_v47  ;;  %v378_v56 = vmul.f32 %v376_v50, %v793_v28  ;;  %v379_v57 = vmul.f32 %v376_v50, %v798_v33  ;;  %v131_v23 = vcombine.high %v816_v11, %v816_v11 }
  0x71   :  { %178 = vadd.xlane.f32.xlu0 %v177_v51  ;;  %v231_v58 = vadd.f32 %v230_v49, %v229_v52  ;;  %v331_v59 = vcombine.high %v327_v53, %v327_v53  ;;  %v332_v60 = vcombine.high %v328_v54, %v328_v54  ;;  %v335_v3 = vsel %vm110_vm0, %v327_v53, 0.0 }
  0x72   :  { %v313_v61 = vadd.f32 %v312_v45, %v311_v55  ;;  %v381_v62 = vmul.f32 %v378_v56, %v813_v10  ;;  %v382_v63 = vmul.f32 %v379_v57, %v816_v11  ;;  %v409_v6 = vmul.f32 %v378_v56, %v378_v56 }
  0x73   :  { %v336_v4 = vsel %vm110_vm0, %v331_v59, 0.0  ;;  %v410_v9 = vmul.f32 %v379_v57, %v379_v57  ;;  %v338_v13 = vsel %vm110_vm0, %v328_v54, 0.0  ;;  %v340_v2 = vsel %vm110_vm0, %v332_v60, 0.0 }
  0x74   :  { %314 = vadd.xlane.f32.xlu1 %v313_v61  ;;  %v385_v12 = vcombine.high %v381_v62, %v381_v62  ;;  %v386_v28 = vcombine.high %v382_v63, %v382_v63  ;;  %v389_v33 = vsel %vm110_vm0, %v381_v62, 0.0  ;;  %v337_v14 = vadd.f32 %v336_v4, %v335_v3 }
  0x75   :  { %232 = vadd.xlane.f32.xlu0 %v231_v58  ;;  %v413_v15 = vcombine.high %v409_v6, %v409_v6  ;;  %v414_v0 = vcombine.high %v410_v9, %v410_v9  ;;  %v417_v1 = vsel %vm110_vm0, %v409_v6, 0.0  ;;  %v392_v17 = vsel %vm110_vm0, %v382_v63, 0.0 }
  0x76   :  { %v390_v16 = vsel %vm110_vm0, %v385_v12, 0.0  ;;  %v339_v18 = vadd.f32 %v338_v13, %v337_v14  ;;  %v420_v20 = vsel %vm110_vm0, %v410_v9, 0.0  ;;  %v394_v21 = vsel %vm110_vm0, %v386_v28, 0.0 }
  0x77   :  { %v391_v5 = vadd.f32 %v390_v16, %v389_v33  ;;  %v418_v19 = vsel %vm110_vm0, %v413_v15, 0.0  ;;  %v130_v24 = vcombine.high %v813_v10, %v813_v10  ;;  %v422_v7 = vsel %vm110_vm0, %v414_v0, 0.0 }
  0x78   :  { %v419_v22 = vadd.f32 %v418_v19, %v417_v1  ;;  %v341_v26 = vadd.f32 %v340_v2, %v339_v18  ;;  %v134_v27 = vsel %vm110_vm0, %v813_v10, 0.0  ;;  %v139_v32 = vsel %vm110_vm0, %v816_v11, 0.0 }
  0x79   :  { %v393_v25 = vadd.f32 %v392_v17, %v391_v5  ;;  %v135_v29 = vsel %vm110_vm0, %v130_v24, 0.0  ;;  %v140_v34 = vsel %vm110_vm0, %v131_v23, 0.0  ;;  %v655_v10 = vmov 0.0  }
  0x7a   :  { %v421_v8 = vadd.f32 %v420_v20, %v419_v22  ;;  %342 = vadd.xlane.f32.xlu0 %v341_v26  ;;  %v136_v35 = vadd.f32 %v135_v29, %v134_v27  ;;  %v141_v36 = vadd.f32 %v140_v34, %v139_v32  ;;  %81 = vst.msk [vmem:[#allocation2] sm:$0x3] %vm80_vm1, %v655_v10  ;;  %v146_v48 = vlaneseq }
  0x7b   :  { %v395_v30 = vadd.f32 %v394_v21, %v393_v25 }
  0x7c   :  { %v423_v31 = vadd.f32 %v422_v7, %v421_v8  ;;  %v147_v56 = vand.u32 127, %v146_v48  ;;  %v149_v57 = vshrl.u32 %v146_v48, 7 }
  0x7d   :  { %396 = vadd.xlane.f32.xlu1 %v395_v30 }
  0x7e   :  { %424 = vadd.xlane.f32.xlu0 %v423_v31  ;;  %v150_v28 = vsub.s32 %v147_v56, %v149_v57 }
  0x81   :  { %137 = vadd.xlane.f32.xlu1 %v136_v35  ;;  %v127_v25 = vld [vmem:[#allocation2] sm:$0x3] }
  0x82   :  { %142 = vadd.xlane.f32.xlu0 %v141_v36 }
  0xfb   :  { %v261_v37 = vpop.xlane.xlu1 %260 }
  0xfc   :  { %v262_v38 = vrot.slane %v261_v37, 4 }
  0xfe   :  { %v263_v39 = vadd.f32 %v262_v38, %v261_v37  ;;  %v179_v40 = vpop.xlane.xlu0 %178 }
  0xff   :  { %v180_v11 = vrot.slane %v179_v40, 4 }
 0x100   :  { %v264_v43 = vrot.slane %v263_v39, 2 }
 0x101   :  { %v181_v41 = vadd.f32 %v180_v11, %v179_v40  ;;  %v315_v42 = vpop.xlane.xlu1 %314 }
 0x102   :  { %v316_v44 = vrot.slane %v315_v42, 4  ;;  %v233_v45 = vpop.xlane.xlu0 %232  ;;  %v265_v53 = vadd.f32 %v264_v43, %v263_v39 }
 0x103   :  { %v182_v46 = vrot.slane %v181_v41, 2  ;;  %v234_v47 = vrot.slane %v233_v45, 4 }
 0x104   :  { %v317_v49 = vadd.f32 %v316_v44, %v315_v42  ;;  %v266_v3 = vrot.slane %v265_v53, 1 }
 0x105   :  { %v235_v50 = vadd.f32 %v234_v47, %v233_v45  ;;  %v183_v51 = vadd.f32 %v182_v46, %v181_v41 }
 0x106   :  { %v318_v52 = vrot.slane %v317_v49, 2  ;;  %v267_v16 = vadd.f32 %v266_v3, %v265_v53 }
 0x107   :  { %v236_v54 = vrot.slane %v235_v50, 2  ;;  %v184_v55 = vrot.slane %v183_v51, 1  ;;  %v343_v58 = vpop.xlane.xlu0 %342 }
 0x108   :  { %v319_v59 = vadd.f32 %v318_v52, %v317_v49  ;;  %v344_v60 = vrot.slane %v343_v58, 4 }
 0x109   :  { %v185_v61 = vadd.f32 %v184_v55, %v183_v51  ;;  %v237_v62 = vadd.f32 %v236_v54, %v235_v50 }
 0x10a   :  { %v397_v63 = vpop.xlane.xlu1 %396  ;;  %v320_v4 = vrot.slane %v319_v59, 1  ;;  %v345_v9 = vadd.f32 %v344_v60, %v343_v58 }
 0x10b   :  { %v398_v6 = vrot.slane %v397_v63, 4  ;;  %478 = vpush %v185_v61  ;;  %v238_v12 = vrot.slane %v237_v62, 1  ;;  %v425_v33 = vpop.xlane.xlu0 %424 }
 0x10c   :  { %v321_v13 = vadd.f32 %v320_v4, %v319_v59  ;;  %v346_v15 = vrot.slane %v345_v9, 2  ;;  %v426_v0 = vrot.slane %v425_v33, 4 }
 0x10d   :  { %v399_v14 = vadd.f32 %v398_v6, %v397_v63  ;;  %v239_v1 = vadd.f32 %v238_v12, %v237_v62 }
 0x10e   :  { %v138_v17 = vpop.xlane.xlu1 %137  ;;  %v427_v5 = vadd.f32 %v426_v0, %v425_v33  ;;  %v347_v18 = vadd.f32 %v346_v15, %v345_v9 }
 0x10f   :  { %v400_v2 = vrot.slane %v399_v14, 2  ;;  %480 = vpush %v239_v1  ;;  %v151_v19 = vrot.slane %v138_v17, %v150_v28  ;;  %v143_v20 = vpop.xlane.xlu0 %142 }
 0x110   :  { %482 = vpush %v267_v16  ;;  %v428_v21 = vrot.slane %v427_v5, 2  ;;  %v348_v22 = vrot.slane %v347_v18, 1  ;;  %v155_v24 = vrot.slane %v143_v20, %v150_v28 }
 0x111   :  { %484 = vpush %v321_v13  ;;  %v401_v23 = vadd.f32 %v400_v2, %v399_v14 }
 0x112   :  { %v349_v26 = vadd.f32 %v348_v22, %v347_v18  ;;  %v429_v8 = vadd.f32 %v428_v21, %v427_v5  ;;  %v157_v27 = vsel %vm156_vm2, %v155_v24, %v151_v19 }
 0x113   :  { %v402_v7 = vrot.slane %v401_v23, 1  ;;  %v159_v29 = vadd.f32 %v157_v27, %v127_v25 }
 0x114   :  { %486 = vpush %v349_v26  ;;  %v430_v31 = vrot.slane %v429_v8, 1 }
 0x115   :  { %v403_v30 = vadd.f32 %v402_v7, %v401_v23  ;;  %161 = vst.msk [vmem:[#allocation2] sm:$0x3] %vm80_vm1, %v159_v29 }
 0x116   :  { %v431_v32 = vadd.f32 %v430_v31, %v429_v8 }
 0x117   :  { %488 = vpush %v403_v30 }
 0x118   :  { %490 = vpush %v431_v32 }
 0x11c   :  { %v439_v34 = vld [vmem:[#allocation2] sm:$0x3] }
 0x11d   :  { %v440_v35 = vmul.f32 0.00390625, %v439_v34 }
 0x11f   :  { %441 = vst.msk [vmem:[#allocation13] sm:$0x3] %vm80_vm1, %v440_v35 }
 0x120   :  { %617 = shalt.err (!%p614_p8)
}
 0x121   :  { %s618_s19 = scalar_lea.hbm %s902_s5, 32 }
 0x122   :  { %p619_p9 = scmp.ne.s32.totalorder %s902_s5, %s618_s19  ;;  %p622_p10 = scmp.lt.u32.totalorder %s618_s19, %s902_s5 }
 0x124   :  { %p624_p11 = pnand %p622_p10, %p619_p9 }
 0x126   :  { %627 = shalt.err (!%p624_p11)
}
 0x127   :  { %459 = dma.vmem_to_hbm [thread:$0]  %s457_s6, 32, %s902_s5, [#allocation5]  }
 0x128   :  { %s628_s11 = scalar_lea.hbm %s901_s4, 16 }
 0x129   :  { %p629_p12 = scmp.ne.s32.totalorder %s901_s4, %s628_s11  ;;  %p632_p13 = scmp.lt.u32.totalorder %s628_s11, %s901_s4 }
 0x12b   :  { %p634_p0 = pnand %p632_p13, %p629_p12 }
 0x13c   :  { %s479_s27 = spop %478 }
 0x13d   :  { %189 = sst [smem:[#allocation12 + $0x1]] %s479_s27 }
 0x140   :  { %s481_s28 = spop %480 }
 0x141   :  { %s483_s29 = spop %482  ;;  %243 = sst [smem:[#allocation12]] %s481_s28 }
 0x142   :  { %s485_s0 = spop %484  ;;  %271 = sst [smem:[#allocation12 + $0x2]] %s483_s29 }
 0x143   :  { %325 = sst [smem:[#allocation12 + $0x3]] %s485_s0 }
 0x145   :  { %s487_s21 = spop %486 }
 0x146   :  { %353 = sst [smem:[#allocation12 + $0x5]] %s487_s21 }
 0x148   :  { %s489_s7 = spop %488 }
 0x149   :  { %s491_s8 = spop %490  ;;  %407 = sst [smem:[#allocation12 + $0x6]] %s489_s7 }
 0x14a   :  { %435 = sst [smem:[#allocation12 + $0x8]] %s491_s8 }
 0x14b   :  { %637 = shalt.err (!%p634_p0)
}
 0x14c   :  { %s657_s15 = smov [#allocation12]  }
 0x14d   :  { %449 = dma.smem_to_hbm %s657_s15, 16, %s901_s4, [#allocation6]  }
 0x14e   :  { %644 = dma.done.wait [#allocation6], 16  }
 0x14f   :  { %645 = vsyncadd [#allocation6], 4294967280 }
 0x150   :  { %646 = dma.done.wait [#allocation5], 32  }
 0x151   :  { %647 = vsyncadd [#allocation5], 4294967264 }
 0x152   :  { %466 = sfence }
 0x153   :  { %467 = vsyncpa [#allocation4], 1 }
 0x154   :  { %468 = vsyncpa [#allocation8], 1 }
 0x155   :  { %469 = vsyncpa [#allocation11], 1 }
 0x156   :  { %470 = vsyncpa [#allocation5], 1 }
 0x157   :  { %471 = vsyncpa [#allocation6], 1 }

</bundles_post_ra>
